<compile_context>
chip_gen: v5e
topology: v5e:2x2
jax: 0.10.0
libtpu: 0.0.40
codegen_flags: <defaults>
</compile_context>

<pallas_src>
import functools

import jax
import jax.numpy as jnp
from jax.experimental import pallas as pl
from jax.experimental.pallas import tpu as pltpu


def _resdowns_kernel(x_ref, w_ref, b_ref, o_ref):
    # x_ref: (Cin, TS)   activation tile, spatial positions in lanes
    # w_ref: (Cout, Cin) bf16 1x1-conv weight with BN scale folded in
    # b_ref: (Cout, 1)   f32 folded BN bias
    # o_ref: (Cout, TS)
    xb = x_ref[...].astype(jnp.bfloat16)
    y = jnp.dot(w_ref[...], xb, preferred_element_type=jnp.float32)  # (Cout, TS)
    o_ref[...] = (y + b_ref[...]).astype(o_ref.dtype)


def resdowns_forward(x_nchw, conv_w, bn_gamma, bn_beta, bn_mean, bn_var,
                     *, eps=1e-5):
    """ResDownS forward.

    x_nchw : (N, Cin, H, W)
    conv_w : (Cout, Cin, 1, 1)  (PyTorch conv weight layout)
    bn_*   : (Cout,) BatchNorm2d affine params / running stats (eval mode).
    """
    N, Cin, H, W = x_nchw.shape
    Cout = conv_w.shape[0]

    # PyTorch: if x.size(3) < 20: x = x[:, :, 4:-4, 4:-4] (applied after the
    # conv).  The 1x1 conv + per-channel BN are pointwise in space, so cropping
    # the INPUT first is mathematically identical and saves ~4x compute and
    # output HBM writes.  (Assumes H, W > 8 when the crop triggers, same as
    # the PyTorch reference.)
    if W < 20:
        x_nchw = x_nchw[:, :, 4:-4, 4:-4]
        H, W = H - 8, W - 8

    S = H * W
    x_rows = x_nchw.reshape(N, Cin, S)          # free contiguous reshape (NCHW kept)

    # Fold BatchNorm (eval mode) into the conv weight and a per-channel bias.
    # TODO(synk): training-mode BN (batch statistics) not implemented.
    scale = (bn_gamma / jnp.sqrt(bn_var + eps)).astype(jnp.float32)   # (Cout,)
    bias = (bn_beta.astype(jnp.float32)
            - bn_mean.astype(jnp.float32) * scale)                    # (Cout,)
    w_mat = conv_w.reshape(Cout, Cin).astype(jnp.float32) * scale[:, None]
    w_mat = w_mat.astype(jnp.bfloat16)                                # (Cout, Cin)
    bias2d = bias.reshape(Cout, 1)

    # Spatial lane tile: one full-width block when it comfortably fits VMEM
    # (S <= 1024 covers SiamMask feature maps, even with Cin=1024 / Cout=256
    # under v5e's 16 MiB scoped default and v7x's 64 MiB VMEM); otherwise
    # 512-lane tiles (multiple of 128 -> legal block, ragged tail masked).
    ts = S if S <= 1024 else 512
    grid = (N, pl.cdiv(S, ts))

    out_rows = pl.pallas_call(
        _resdowns_kernel,
        out_shape=jax.ShapeDtypeStruct((N, Cout, S), x_nchw.dtype),
        grid_spec=pltpu.PrefetchScalarGridSpec(
            num_scalar_prefetch=0,
            grid=grid,
            in_specs=[
                pl.BlockSpec((None, Cin, ts), lambda n, s: (n, 0, s)),
                pl.BlockSpec((Cout, Cin), lambda n, s: (0, 0)),
                pl.BlockSpec((Cout, 1), lambda n, s: (0, 0)),
            ],
            out_specs=pl.BlockSpec((None, Cout, ts), lambda n, s: (n, 0, s)),
        ),
        compiler_params=pltpu.CompilerParams(
            dimension_semantics=("parallel", "parallel")),
    )(x_rows, w_mat, bias2d)

    return out_rows.reshape(N, Cout, H, W)      # free contiguous reshape


if __name__ == "__main__":
    key = jax.random.PRNGKey(0)
    k_x, k_w, k_g, k_b, k_m, k_v = jax.random.split(key, 6)

    N, Cin, H, W = 2, 4, 16, 16
    Cout = 8

    x = jax.random.normal(k_x, (N, Cin, H, W), dtype=jnp.float32)
    conv_w = jax.random.normal(k_w, (Cout, Cin, 1, 1), dtype=jnp.float32) * 0.1
    bn_gamma = 1.0 + 0.1 * jax.random.normal(k_g, (Cout,), dtype=jnp.float32)
    bn_beta = 0.1 * jax.random.normal(k_b, (Cout,), dtype=jnp.float32)
    bn_mean = 0.05 * jax.random.normal(k_m, (Cout,), dtype=jnp.float32)
    bn_var = 1.0 + 0.1 * jax.random.uniform(k_v, (Cout,), dtype=jnp.float32)

    fwd = jax.jit(functools.partial(resdowns_forward, eps=1e-5))
    out = fwd(x, conv_w, bn_gamma, bn_beta, bn_mean, bn_var)
    out = jax.block_until_ready(out)

    # Plain-JAX f32 reference (same math, no Pallas).
    scale = bn_gamma / jnp.sqrt(bn_var + 1e-5)
    bias = bn_beta - bn_mean * scale
    ref = jnp.einsum("nchw,oc->nohw", x, conv_w.reshape(Cout, Cin))
    ref = ref * scale[None, :, None, None] + bias[None, :, None, None]
    ref = ref[:, :, 4:-4, 4:-4]

    assert out.shape == (N, Cout, H - 8, W - 8), out.shape
    # bf16 MXU operands (f32 accumulation) -> relaxed tolerance vs f32 reference.
    err = float(jnp.max(jnp.abs(out - ref)))
    assert jnp.allclose(out, ref, atol=3e-2, rtol=3e-2), err
    print("KERNEL_OK")
</pallas_src>

<mosaic_0001>
module attributes {stable_mosaic.version = 11 : i64} {
  func.func @_resdowns_kernel(%arg0: i32, %arg1: i32, %arg2: memref<1x4x64xf32, #tpu.memory_space<vmem>>, %arg3: memref<8x4xbf16, #tpu.memory_space<vmem>>, %arg4: memref<8x1xf32, #tpu.memory_space<vmem>>, %arg5: memref<1x8x64xf32, #tpu.memory_space<vmem>>) attributes {dimension_semantics = [#tpu.dimension_semantics<parallel>, #tpu.dimension_semantics<parallel>], iteration_bounds = array<i64: 2, 1>, scalar_prefetch = 0 : i64, scratch_operands = 0 : i64, tpu.core_type = #tpu.core_type<tc>, window_params = [{transform_indices = @transform_0, window_bounds = array<i64: 1, 4, 64>}, {pipeline_mode = #tpu.pipeline_mode<synchronous>, transform_indices = @transform_1, window_bounds = array<i64: 8, 4>}, {pipeline_mode = #tpu.pipeline_mode<synchronous>, transform_indices = @transform_2, window_bounds = array<i64: 8, 1>}, {transform_indices = @transform_3, window_bounds = array<i64: 1, 8, 64>}]} {
    %c0 = arith.constant 0 : index
    %c0_0 = arith.constant 0 : index
    %c0_1 = arith.constant 0 : index
    %0 = vector.load %arg2[%c0, %c0_0, %c0_1] : memref<1x4x64xf32, #tpu.memory_space<vmem>>, vector<1x4x64xf32>
    %1 = vector.shape_cast %0 : vector<1x4x64xf32> to vector<4x64xf32>
    %2 = arith.truncf %1 : vector<4x64xf32> to vector<4x64xbf16>
    %c0_2 = arith.constant 0 : index
    %c0_3 = arith.constant 0 : index
    %3 = vector.load %arg3[%c0_2, %c0_3] : memref<8x4xbf16, #tpu.memory_space<vmem>>, vector<8x4xbf16>
    %cst = arith.constant dense<0.000000e+00> : vector<8x64xf32>
    %4 = tpu.matmul %3, %2, %cst {dimension_numbers = #tpu.dot_dimension_numbers<[1], [0], [0], [1], [0, 0, 1, 1], [], []>} : vector<8x4xbf16>, vector<4x64xbf16>, vector<8x64xf32> -> vector<8x64xf32>
    %c0_4 = arith.constant 0 : index
    %c0_5 = arith.constant 0 : index
    %5 = vector.load %arg4[%c0_4, %c0_5] : memref<8x1xf32, #tpu.memory_space<vmem>>, vector<8x1xf32>
    %6 = vector.broadcast %5 : vector<8x1xf32> to vector<8x64xf32>
    %7 = arith.addf %4, %6 : vector<8x64xf32>
    %c0_6 = arith.constant 0 : index
    %c0_7 = arith.constant 0 : index
    %c0_8 = arith.constant 0 : index
    %8 = vector.load %arg5[%c0_6, %c0_7, %c0_8] : memref<1x8x64xf32, #tpu.memory_space<vmem>>, vector<1x8x64xf32>
    %9 = vector.shape_cast %8 : vector<1x8x64xf32> to vector<8x64xf32>
    %10 = vector.shape_cast %7 : vector<8x64xf32> to vector<1x8x64xf32>
    tpu.vector_store %arg5[%c0_6, %c0_7, %c0_8], %10 {strides = array<i32>} : memref<1x8x64xf32, #tpu.memory_space<vmem>>, vector<1x8x64xf32>,
    return
  }
  func.func @transform_0(%arg0: i32, %arg1: i32) -> (i32, i32, i32) {
    %c0_i32 = arith.constant 0 : i32
    %c0_i32_0 = arith.constant 0 : i32
    return %arg0, %c0_i32, %arg1 : i32, i32, i32
  }
  func.func @transform_1(%arg0: i32, %arg1: i32) -> (i32, i32) {
    %c0_i32 = arith.constant 0 : i32
    %c0_i32_0 = arith.constant 0 : i32
    %c0_i32_1 = arith.constant 0 : i32
    return %c0_i32, %c0_i32_0 : i32, i32
  }
  func.func @transform_2(%arg0: i32, %arg1: i32) -> (i32, i32) {
    %c0_i32 = arith.constant 0 : i32
    %c0_i32_0 = arith.constant 0 : i32
    %c0_i32_1 = arith.constant 0 : i32
    return %c0_i32, %c0_i32_0 : i32, i32
  }
  func.func @transform_3(%arg0: i32, %arg1: i32) -> (i32, i32, i32) {
    %c0_i32 = arith.constant 0 : i32
    %c0_i32_0 = arith.constant 0 : i32
    return %arg0, %c0_i32, %arg1 : i32, i32, i32
  }
}

</mosaic_0001>

<bundles_post_ra>
// kernel: resdowns_forward.1
= control target key start
LH: loop header
LB: loop body
LE: loop exit
PB: predicated region body
PF: predicated region fallthrough
CT: control target
= control target key end

     0   :  { %s385_s12 = smov 0   ;;  %s387_s13 = smov 0   ;;  %s424_s0 = inlined_call_operand.vmem [shape: f32[2,4,64], index: 0, kind: input, shape index: {}]   ;;  %s425_s1 = inlined_call_operand.vmem [shape: bf16[8,4], index: 1, kind: input, shape index: {}]   ;;  %s426_s2 = inlined_call_operand.vmem [shape: f32[8,1], index: 2, kind: input, shape index: {}]   ;;  %s427_s3 = inlined_call_operand.vmem [shape: f32[2,8,64], index: 3, kind: output, shape index: {}]  }
   0x1   :  { %s389_s14 = smov 0  }
   0x2 LB: > { %s25_s15 = sadd.s32 1, %s358_s13  ;;  %p308_p0 = scmp.ge.s32.totalorder %s362_s14, 1  ;;  %s362_s14 = sphi %s389_s14, %s13_s14   ;;  %s358_s13 = sphi %s387_s13, %s429_s13   ;;  %s354_s12 = sphi %s385_s12, %s428_s12  }
   0x3   : > { %p27_p1 = scmp.ge.s32.totalorder %s25_s15, 2  ;;  %p155_p2 = scmp.lt.s32.totalorder %s362_s14, 3 }
   0x5   : > { %s431_s15 = smov (%p27_p1, %s25_s15), 0  ;;  %p156_p3 = pnand %p308_p0, %p155_p2 }
   0x6   : > { %p183_p4 = scmp.lt.s32.totalorder (!%p156_p3), %s354_s12, 1 }
   0x7   : > { %159 = sbr.rel (%p156_p3) target bundleno = 156 (0x9c), region = 32 }
   0xc   : > { %v364_v0 = vmov 0   ;;  %v201_v1 = vld [vmem:[%s426_s2] sm:$0xff]  ;;  %s433_s12 = smov (!%p183_p4, %s354_s12), 1  ;;  %vm211_vm0 = vcmask 1041408   ;;  %vm207_vm1 = vcmask 31744   ;;  %vm228_vm2 = vcmask 523264  }
   0xd   : > { %339 = vset.pattern.permute.xlu0 %v364_v0  ;;  %s309_s18 = sshll.u32 %s433_s12, 2  ;;  %v200_v5 = vld [vmem:[%s425_s1] sm:$0xf]  ;;  %s310_s24 = sshll.u32 %s433_s12, 3 }
   0xe   : > { %204 = vperm.xlu0 %339, %v201_v1   ;;  %s189_s21 = scalar_lea.vmem %s424_s0, %s309_s18  ;;  %s196_s27 = scalar_lea.vmem %s427_s3, %s310_s24 }
   0xf   : > { %v198_v2 = vld [vmem:[%s189_s21] sm:$0xf] }
  0x10   : > { %v199_v3 = vpack.c.bf16 %v198_v2, %v198_v2 }
  0x12   : > { %v213_v4 = vsel %vm211_vm0, %v199_v3, 0 }
  0x13   : > { %222 = vmatpush.bf16.msra.mxu0 %v213_v4 }
  0x16   : > { %311 = vmatmul.msk.bf16.vlgmr.msra.gmra.mxu0 %vm207_vm1, %v200_v5 }
  0x80   : > { %v205_v6 = vpop.permute.xlu0 %204 }
  0x93   : > { %v224_v7 = vpop.f32.mrf.mxu0 }
  0x94   : > { %v225_v8 = vadd.f32 %v224_v7, %v205_v6 }
  0x96   : > { %229 = vst.msk [vmem:[%s196_s27] sm:$0xff] %vm228_vm2, %v225_v8 }
  0x9b   : > { %v226_v9 = vpop.f32.mrf.mxu0 }
  0x9c PF: > { %s13_s14 = sadd.s32 1, %s362_s14   ;;  %s428_s12 = smov %s358_s13 }
  0x9d   : > { %p10_p5 = scmp.ge.s32.totalorder %s13_s14, 4   ;;  %s429_s13 = smov %s431_s15 }
  0x9f   :  { %12 = sbr.rel (!%p10_p5) target bundleno = 2 (0x2), region = 62 }

</bundles_post_ra>
